<compile_context>
chip_gen: v7x
topology: tpu7x:2x2x1
jax: 0.10.0
libtpu: 0.0.40
codegen_flags: <defaults>
</compile_context>

<pallas_src>
import functools

import numpy as np
import jax
import jax.numpy as jnp
from jax.experimental import pallas as pl
from jax.experimental.pallas import tpu as pltpu


KH = KW = 4      # kernel_size
STRIDE = 2
PAD = 1
BN_EPS = 1e-5


def _shift_lanes(c, sh):
    """result[:, i] = c[:, i - sh], zero fill at the array boundary (static sh)."""
    if sh == 0:
        return c
    rows, m = c.shape
    z = jnp.zeros((rows, abs(sh)), c.dtype)
    if sh > 0:
        return jnp.concatenate([z, c[:, : m - sh]], axis=1)
    return jnp.concatenate([c[:, -sh:], z], axis=1)


def _deconv_bn_kernel(x_ref, w_ref, b_ref, mask_ref, o_ref, *, w_in, c_out, batch_norm):
    """Fused ReLU -> ConvTranspose2d(4, 2, 1) -> bias -> BatchNorm2d (train stats).

    x_ref    : (Cin, M)          f32, M = N*H*W, lanes = flattened (n, iy, ix)
    w_ref    : (KH*KW*Cout, Cin) bf16, rows ordered (ky, kx, co)
    b_ref    : (Cout, 1)         f32
    mask_ref : (4, M)            f32 0/1 masks: [iy>0, iy<H-1, ix>0, ix<W-1]
    o_ref    : (4*Cout, M)       f32, rows ordered (py, px, co)
    """
    m = x_ref.shape[1]

    # ReLU in f32; only the MXU operands are downcast to bf16.
    xr = jnp.maximum(x_ref[...], 0.0)
    cols = jnp.dot(w_ref[...], xr.astype(jnp.bfloat16),
                   preferred_element_type=jnp.float32)            # (16*Cout, M) f32

    masks = mask_ref[...]
    row_gt0, row_lt_last = masks[0:1, :], masks[1:2, :]
    col_gt0, col_lt_last = masks[2:3, :], masks[3:4, :]

    # Output pixel (2*iy + py, 2*ix + px) receives tap (ky, kx) from input (iy', ix'):
    #   py=0: (ky=1, iy'=iy) and (ky=3, iy'=iy-1)  -> lane shift +W, valid iff iy>0
    #   py=1: (ky=2, iy'=iy) and (ky=0, iy'=iy+1)  -> lane shift -W, valid iff iy<H-1
    # (same structure along x with kx / px / shifts of +-1).
    row_taps = {0: ((1, 0, None), (3, +w_in, row_gt0)),
                1: ((2, 0, None), (0, -w_in, row_lt_last))}
    col_taps = {0: ((1, 0, None), (3, +1, col_gt0)),
                1: ((2, 0, None), (0, -1, col_lt_last))}

    planes = []
    for py in (0, 1):
        for px in (0, 1):
            acc = None
            for ky, sy, my in row_taps[py]:
                for kx, sx, mx in col_taps[px]:
                    tap = (ky * KW + kx) * c_out
                    c = _shift_lanes(cols[tap:tap + c_out, :], sy + sx)
                    if my is not None:
                        c = c * my
                    if mx is not None:
                        c = c * mx
                    acc = c if acc is None else acc + c
            planes.append(acc + b_ref[...])                       # ConvTranspose2d bias

    if batch_norm:
        # BatchNorm2d in training mode: batch stats, biased variance, gamma=1, beta=0.
        count = 4.0 * m                                           # = N * OH * OW
        mean = sum(p.sum(axis=1, keepdims=True) for p in planes) / count
        var = sum(((p - mean) ** 2).sum(axis=1, keepdims=True) for p in planes) / count
        inv = jax.lax.rsqrt(var + BN_EPS)
        planes = [(p - mean) * inv for p in planes]

    o_ref[...] = jnp.concatenate(planes, axis=0).astype(o_ref.dtype)  # lane-dense store


def deconv_block_forward(params, x_nchw, *, batch_norm=True, dropout=False):
    """DeconvBlock.forward: bn(deconv(relu(x))).  x: (N, Cin, H, W) -> (N, Cout, 2H, 2W).

    params = (weight, bias) with weight in PyTorch ConvTranspose2d layout
    (Cin, Cout, KH, KW) and bias (Cout,).
    """
    weight, bias = params
    n, c_in, h, w = x_nchw.shape
    c_in_w, c_out, kh, kw = weight.shape
    assert (kh, kw) == (KH, KW) and c_in_w == c_in
    m = n * h * w

    # Host-side layout plumbing of tiny tensors; the kernel never reads an
    # HBM-materialized im2col.
    x2d = jnp.transpose(x_nchw, (1, 0, 2, 3)).reshape(c_in, m)            # (Cin, M) f32
    w2d = (jnp.transpose(weight, (2, 3, 1, 0))
           .reshape(KH * KW * c_out, c_in).astype(jnp.bfloat16))          # bf16 weights
    b2d = bias.reshape(c_out, 1).astype(jnp.float32)

    # Precomputed 0/1 boundary masks for the col2im lane shifts (static shapes).
    s = np.arange(m)
    iy = (s // w) % h
    ix = s % w
    masks = jnp.asarray(np.stack([iy > 0, iy < h - 1, ix > 0, ix < w - 1])
                        .astype(np.float32))                              # (4, M)

    out2d = pl.pallas_call(
        functools.partial(_deconv_bn_kernel, w_in=w, c_out=c_out,
                          batch_norm=batch_norm),
        out_shape=jax.ShapeDtypeStruct((4 * c_out, m), jnp.float32),
        grid_spec=pltpu.PrefetchScalarGridSpec(
            num_scalar_prefetch=0,
            grid=(1,),                      # single step: everything lives in VMEM
            in_specs=[
                pl.BlockSpec((c_in, m), lambda i: (0, 0)),
                pl.BlockSpec((KH * KW * c_out, c_in), lambda i: (0, 0)),
                pl.BlockSpec((c_out, 1), lambda i: (0, 0)),
                pl.BlockSpec((4, m), lambda i: (0, 0)),
            ],
            out_specs=pl.BlockSpec((4 * c_out, m), lambda i: (0, 0)),
        ),
        compiler_params=pltpu.CompilerParams(
            dimension_semantics=("arbitrary",)),
    )(x2d, w2d, b2d, masks)

    # (py, px, co, n, iy, ix) -> (n, co, iy, py, ix, px) -> (N, Cout, 2H, 2W)
    y = (out2d.reshape(2, 2, c_out, n, h, w)
         .transpose(3, 2, 4, 0, 5, 1)
         .reshape(n, c_out, 2 * h, 2 * w))

    # TODO(synk): Dropout(0.5) (the dropout=True config) is not applied; the module's
    # default forward path has dropout=False.
    return y


# ------------------------- pure-JAX reference (f32) --------------------------
def _reference_forward(x, weight, bias, *, batch_norm=True):
    xr = jnp.maximum(x, 0.0)
    # ConvTranspose2d == lhs-dilated conv with the spatially-flipped, channel-swapped kernel.
    w_conv = jnp.transpose(weight, (1, 0, 2, 3))[:, :, ::-1, ::-1]
    y = jax.lax.conv_general_dilated(
        xr, w_conv, window_strides=(1, 1),
        padding=[(KH - 1 - PAD, KH - 1 - PAD), (KW - 1 - PAD, KW - 1 - PAD)],
        lhs_dilation=(STRIDE, STRIDE), rhs_dilation=(1, 1),
        dimension_numbers=("NCHW", "OIHW", "NCHW"))
    y = y + bias[None, :, None, None]
    if batch_norm:
        mean = y.mean(axis=(0, 2, 3), keepdims=True)
        var = ((y - mean) ** 2).mean(axis=(0, 2, 3), keepdims=True)
        y = (y - mean) / jnp.sqrt(var + BN_EPS)
    return y


# ---------------------------------- driver -----------------------------------
if __name__ == "__main__":
    key = jax.random.PRNGKey(0)
    kx, kw_, kb = jax.random.split(key, 3)

    n, c_in, h, w = 2, 32, 8, 8            # input  (N, Cin, H, W);  M = N*H*W = 128
    c_out = 16                             # output (N, Cout, 16, 16)

    x = jax.random.normal(kx, (n, c_in, h, w), jnp.float32)
    weight = 0.05 * jax.random.normal(kw_, (c_in, c_out, KH, KW), jnp.float32)
    bias = 0.05 * jax.random.normal(kb, (c_out,), jnp.float32)
    params = (weight, bias)

    for bn in (True, False):               # batch_norm=True is the module default
        out = jax.block_until_ready(deconv_block_forward(params, x, batch_norm=bn))
        assert out.shape == (n, c_out, 2 * h, 2 * w), out.shape
        ref = _reference_forward(x, weight, bias, batch_norm=bn)
        err = float(jnp.max(jnp.abs(out - ref)))
        assert err < 5e-2, (bn, err)       # bf16-MXU vs f32 reference tolerance

    print("KERNEL_OK")
</pallas_src>

<mosaic_0001>
module attributes {stable_mosaic.version = 11 : i64} {
  func.func @_deconv_bn_kernel(%arg0: i32, %arg1: memref<32x128xf32, #tpu.memory_space<vmem>>, %arg2: memref<256x32xbf16, #tpu.memory_space<vmem>>, %arg3: memref<16x1xf32, #tpu.memory_space<vmem>>, %arg4: memref<4x128xf32, #tpu.memory_space<vmem>>, %arg5: memref<64x128xf32, #tpu.memory_space<vmem>>) attributes {dimension_semantics = [#tpu.dimension_semantics<arbitrary>], iteration_bounds = array<i64: 1>, scalar_prefetch = 0 : i64, scratch_operands = 0 : i64, tpu.core_type = #tpu.core_type<tc>, window_params = [{pipeline_mode = #tpu.pipeline_mode<synchronous>, transform_indices = @transform_0, window_bounds = array<i64: 32, 128>}, {pipeline_mode = #tpu.pipeline_mode<synchronous>, transform_indices = @transform_1, window_bounds = array<i64: 256, 32>}, {pipeline_mode = #tpu.pipeline_mode<synchronous>, transform_indices = @transform_2, window_bounds = array<i64: 16, 1>}, {pipeline_mode = #tpu.pipeline_mode<synchronous>, transform_indices = @transform_3, window_bounds = array<i64: 4, 128>}, {pipeline_mode = #tpu.pipeline_mode<synchronous>, transform_indices = @transform_4, window_bounds = array<i64: 64, 128>}]} {
    %c0 = arith.constant 0 : index
    %c0_0 = arith.constant 0 : index
    %0 = vector.load %arg1[%c0, %c0_0] : memref<32x128xf32, #tpu.memory_space<vmem>>, vector<32x128xf32>
    %cst = arith.constant 0.000000e+00 : f32
    %1 = vector.broadcast %cst : f32 to vector<32x128xf32>
    %2 = arith.maximumf %0, %1 : vector<32x128xf32>
    %c0_1 = arith.constant 0 : index
    %c0_2 = arith.constant 0 : index
    %3 = vector.load %arg2[%c0_1, %c0_2] : memref<256x32xbf16, #tpu.memory_space<vmem>>, vector<256x32xbf16>
    %4 = arith.truncf %2 : vector<32x128xf32> to vector<32x128xbf16>
    %cst_3 = arith.constant dense<0.000000e+00> : vector<256x128xf32>
    %5 = tpu.matmul %3, %4, %cst_3 {dimension_numbers = #tpu.dot_dimension_numbers<[1], [0], [0], [1], [0, 0, 1, 1], [], []>} : vector<256x32xbf16>, vector<32x128xbf16>, vector<256x128xf32> -> vector<256x128xf32>
    %c0_4 = arith.constant 0 : index
    %c0_5 = arith.constant 0 : index
    %6 = vector.load %arg4[%c0_4, %c0_5] : memref<4x128xf32, #tpu.memory_space<vmem>>, vector<4x128xf32>
    %7 = vector.extract_strided_slice %6 {offsets = [0, 0], sizes = [1, 128], strides = [1, 1]} : vector<4x128xf32> to vector<1x128xf32>
    %8 = vector.extract_strided_slice %6 {offsets = [1, 0], sizes = [1, 128], strides = [1, 1]} : vector<4x128xf32> to vector<1x128xf32>
    %9 = vector.extract_strided_slice %6 {offsets = [2, 0], sizes = [1, 128], strides = [1, 1]} : vector<4x128xf32> to vector<1x128xf32>
    %10 = vector.extract_strided_slice %6 {offsets = [3, 0], sizes = [1, 128], strides = [1, 1]} : vector<4x128xf32> to vector<1x128xf32>
    %11 = vector.extract_strided_slice %5 {offsets = [80, 0], sizes = [16, 128], strides = [1, 1]} : vector<256x128xf32> to vector<16x128xf32>
    %12 = vector.extract_strided_slice %5 {offsets = [112, 0], sizes = [16, 128], strides = [1, 1]} : vector<256x128xf32> to vector<16x128xf32>
    %cst_6 = arith.constant 0.000000e+00 : f32
    %13 = vector.broadcast %cst_6 : f32 to vector<16x1xf32>
    %14 = vector.extract_strided_slice %12 {offsets = [0, 0], sizes = [16, 127], strides = [1, 1]} : vector<16x128xf32> to vector<16x127xf32>
    %15 = tpu.concatenate %13, %14 in 1 : vector<16x1xf32>, vector<16x127xf32> -> vector<16x128xf32>
    %16 = vector.broadcast %9 : vector<1x128xf32> to vector<16x128xf32>
    %17 = arith.mulf %15, %16 : vector<16x128xf32>
    %18 = arith.addf %11, %17 : vector<16x128xf32>
    %19 = vector.extract_strided_slice %5 {offsets = [208, 0], sizes = [16, 128], strides = [1, 1]} : vector<256x128xf32> to vector<16x128xf32>
    %cst_7 = arith.constant 0.000000e+00 : f32
    %20 = vector.broadcast %cst_7 : f32 to vector<16x8xf32>
    %21 = vector.extract_strided_slice %19 {offsets = [0, 0], sizes = [16, 120], strides = [1, 1]} : vector<16x128xf32> to vector<16x120xf32>
    %22 = tpu.concatenate %20, %21 in 1 : vector<16x8xf32>, vector<16x120xf32> -> vector<16x128xf32>
    %23 = vector.broadcast %7 : vector<1x128xf32> to vector<16x128xf32>
    %24 = arith.mulf %22, %23 : vector<16x128xf32>
    %25 = arith.addf %18, %24 : vector<16x128xf32>
    %26 = vector.extract_strided_slice %5 {offsets = [240, 0], sizes = [16, 128], strides = [1, 1]} : vector<256x128xf32> to vector<16x128xf32>
    %cst_8 = arith.constant 0.000000e+00 : f32
    %27 = vector.broadcast %cst_8 : f32 to vector<16x9xf32>
    %28 = vector.extract_strided_slice %26 {offsets = [0, 0], sizes = [16, 119], strides = [1, 1]} : vector<16x128xf32> to vector<16x119xf32>
    %29 = tpu.concatenate %27, %28 in 1 : vector<16x9xf32>, vector<16x119xf32> -> vector<16x128xf32>
    %30 = vector.broadcast %7 : vector<1x128xf32> to vector<16x128xf32>
    %31 = arith.mulf %29, %30 : vector<16x128xf32>
    %32 = vector.broadcast %9 : vector<1x128xf32> to vector<16x128xf32>
    %33 = arith.mulf %31, %32 : vector<16x128xf32>
    %34 = arith.addf %25, %33 : vector<16x128xf32>
    %c0_9 = arith.constant 0 : index
    %c0_10 = arith.constant 0 : index
    %35 = vector.load %arg3[%c0_9, %c0_10] : memref<16x1xf32, #tpu.memory_space<vmem>>, vector<16x1xf32>
    %36 = vector.broadcast %35 : vector<16x1xf32> to vector<16x128xf32>
    %37 = arith.addf %34, %36 : vector<16x128xf32>
    %38 = vector.extract_strided_slice %5 {offsets = [96, 0], sizes = [16, 128], strides = [1, 1]} : vector<256x128xf32> to vector<16x128xf32>
    %39 = vector.extract_strided_slice %5 {offsets = [64, 0], sizes = [16, 128], strides = [1, 1]} : vector<256x128xf32> to vector<16x128xf32>
    %cst_11 = arith.constant 0.000000e+00 : f32
    %40 = vector.broadcast %cst_11 : f32 to vector<16x1xf32>
    %41 = vector.extract_strided_slice %39 {offsets = [0, 1], sizes = [16, 127], strides = [1, 1]} : vector<16x128xf32> to vector<16x127xf32>
    %42 = tpu.concatenate %41, %40 in 1 : vector<16x127xf32>, vector<16x1xf32> -> vector<16x128xf32>
    %43 = vector.broadcast %10 : vector<1x128xf32> to vector<16x128xf32>
    %44 = arith.mulf %42, %43 : vector<16x128xf32>
    %45 = arith.addf %38, %44 : vector<16x128xf32>
    %46 = vector.extract_strided_slice %5 {offsets = [224, 0], sizes = [16, 128], strides = [1, 1]} : vector<256x128xf32> to vector<16x128xf32>
    %cst_12 = arith.constant 0.000000e+00 : f32
    %47 = vector.broadcast %cst_12 : f32 to vector<16x8xf32>
    %48 = vector.extract_strided_slice %46 {offsets = [0, 0], sizes = [16, 120], strides = [1, 1]} : vector<16x128xf32> to vector<16x120xf32>
    %49 = tpu.concatenate %47, %48 in 1 : vector<16x8xf32>, vector<16x120xf32> -> vector<16x128xf32>
    %50 = vector.broadcast %7 : vector<1x128xf32> to vector<16x128xf32>
    %51 = arith.mulf %49, %50 : vector<16x128xf32>
    %52 = arith.addf %45, %51 : vector<16x128xf32>
    %53 = vector.extract_strided_slice %5 {offsets = [192, 0], sizes = [16, 128], strides = [1, 1]} : vector<256x128xf32> to vector<16x128xf32>
    %cst_13 = arith.constant 0.000000e+00 : f32
    %54 = vector.broadcast %cst_13 : f32 to vector<16x7xf32>
    %55 = vector.extract_strided_slice %53 {offsets = [0, 0], sizes = [16, 121], strides = [1, 1]} : vector<16x128xf32> to vector<16x121xf32>
    %56 = tpu.concatenate %54, %55 in 1 : vector<16x7xf32>, vector<16x121xf32> -> vector<16x128xf32>
    %57 = vector.broadcast %7 : vector<1x128xf32> to vector<16x128xf32>
    %58 = arith.mulf %56, %57 : vector<16x128xf32>
    %59 = vector.broadcast %10 : vector<1x128xf32> to vector<16x128xf32>
    %60 = arith.mulf %58, %59 : vector<16x128xf32>
    %61 = arith.addf %52, %60 : vector<16x128xf32>
    %c0_14 = arith.constant 0 : index
    %c0_15 = arith.constant 0 : index
    %62 = vector.load %arg3[%c0_14, %c0_15] : memref<16x1xf32, #tpu.memory_space<vmem>>, vector<16x1xf32>
    %63 = vector.broadcast %62 : vector<16x1xf32> to vector<16x128xf32>
    %64 = arith.addf %61, %63 : vector<16x128xf32>
    %65 = vector.extract_strided_slice %5 {offsets = [144, 0], sizes = [16, 128], strides = [1, 1]} : vector<256x128xf32> to vector<16x128xf32>
    %66 = vector.extract_strided_slice %5 {offsets = [176, 0], sizes = [16, 128], strides = [1, 1]} : vector<256x128xf32> to vector<16x128xf32>
    %cst_16 = arith.constant 0.000000e+00 : f32
    %67 = vector.broadcast %cst_16 : f32 to vector<16x1xf32>
    %68 = vector.extract_strided_slice %66 {offsets = [0, 0], sizes = [16, 127], strides = [1, 1]} : vector<16x128xf32> to vector<16x127xf32>
    %69 = tpu.concatenate %67, %68 in 1 : vector<16x1xf32>, vector<16x127xf32> -> vector<16x128xf32>
    %70 = vector.broadcast %9 : vector<1x128xf32> to vector<16x128xf32>
    %71 = arith.mulf %69, %70 : vector<16x128xf32>
    %72 = arith.addf %65, %71 : vector<16x128xf32>
    %73 = vector.extract_strided_slice %5 {offsets = [16, 0], sizes = [16, 128], strides = [1, 1]} : vector<256x128xf32> to vector<16x128xf32>
    %cst_17 = arith.constant 0.000000e+00 : f32
    %74 = vector.broadcast %cst_17 : f32 to vector<16x8xf32>
    %75 = vector.extract_strided_slice %73 {offsets = [0, 8], sizes = [16, 120], strides = [1, 1]} : vector<16x128xf32> to vector<16x120xf32>
    %76 = tpu.concatenate %75, %74 in 1 : vector<16x120xf32>, vector<16x8xf32> -> vector<16x128xf32>
    %77 = vector.broadcast %8 : vector<1x128xf32> to vector<16x128xf32>
    %78 = arith.mulf %76, %77 : vector<16x128xf32>
    %79 = arith.addf %72, %78 : vector<16x128xf32>
    %80 = vector.extract_strided_slice %5 {offsets = [48, 0], sizes = [16, 128], strides = [1, 1]} : vector<256x128xf32> to vector<16x128xf32>
    %cst_18 = arith.constant 0.000000e+00 : f32
    %81 = vector.broadcast %cst_18 : f32 to vector<16x7xf32>
    %82 = vector.extract_strided_slice %80 {offsets = [0, 7], sizes = [16, 121], strides = [1, 1]} : vector<16x128xf32> to vector<16x121xf32>
    %83 = tpu.concatenate %82, %81 in 1 : vector<16x121xf32>, vector<16x7xf32> -> vector<16x128xf32>
    %84 = vector.broadcast %8 : vector<1x128xf32> to vector<16x128xf32>
    %85 = arith.mulf %83, %84 : vector<16x128xf32>
    %86 = vector.broadcast %9 : vector<1x128xf32> to vector<16x128xf32>
    %87 = arith.mulf %85, %86 : vector<16x128xf32>
    %88 = arith.addf %79, %87 : vector<16x128xf32>
    %c0_19 = arith.constant 0 : index
    %c0_20 = arith.constant 0 : index
    %89 = vector.load %arg3[%c0_19, %c0_20] : memref<16x1xf32, #tpu.memory_space<vmem>>, vector<16x1xf32>
    %90 = vector.broadcast %89 : vector<16x1xf32> to vector<16x128xf32>
    %91 = arith.addf %88, %90 : vector<16x128xf32>
    %92 = vector.extract_strided_slice %5 {offsets = [160, 0], sizes = [16, 128], strides = [1, 1]} : vector<256x128xf32> to vector<16x128xf32>
    %93 = vector.extract_strided_slice %5 {offsets = [128, 0], sizes = [16, 128], strides = [1, 1]} : vector<256x128xf32> to vector<16x128xf32>
    %cst_21 = arith.constant 0.000000e+00 : f32
    %94 = vector.broadcast %cst_21 : f32 to vector<16x1xf32>
    %95 = vector.extract_strided_slice %93 {offsets = [0, 1], sizes = [16, 127], strides = [1, 1]} : vector<16x128xf32> to vector<16x127xf32>
    %96 = tpu.concatenate %95, %94 in 1 : vector<16x127xf32>, vector<16x1xf32> -> vector<16x128xf32>
    %97 = vector.broadcast %10 : vector<1x128xf32> to vector<16x128xf32>
    %98 = arith.mulf %96, %97 : vector<16x128xf32>
    %99 = arith.addf %92, %98 : vector<16x128xf32>
    %100 = vector.extract_strided_slice %5 {offsets = [32, 0], sizes = [16, 128], strides = [1, 1]} : vector<256x128xf32> to vector<16x128xf32>
    %cst_22 = arith.constant 0.000000e+00 : f32
    %101 = vector.broadcast %cst_22 : f32 to vector<16x8xf32>
    %102 = vector.extract_strided_slice %100 {offsets = [0, 8], sizes = [16, 120], strides = [1, 1]} : vector<16x128xf32> to vector<16x120xf32>
    %103 = tpu.concatenate %102, %101 in 1 : vector<16x120xf32>, vector<16x8xf32> -> vector<16x128xf32>
    %104 = vector.broadcast %8 : vector<1x128xf32> to vector<16x128xf32>
    %105 = arith.mulf %103, %104 : vector<16x128xf32>
    %106 = arith.addf %99, %105 : vector<16x128xf32>
    %107 = vector.extract_strided_slice %5 {offsets = [0, 0], sizes = [16, 128], strides = [1, 1]} : vector<256x128xf32> to vector<16x128xf32>
    %cst_23 = arith.constant 0.000000e+00 : f32
    %108 = vector.broadcast %cst_23 : f32 to vector<16x9xf32>
    %109 = vector.extract_strided_slice %107 {offsets = [0, 9], sizes = [16, 119], strides = [1, 1]} : vector<16x128xf32> to vector<16x119xf32>
    %110 = tpu.concatenate %109, %108 in 1 : vector<16x119xf32>, vector<16x9xf32> -> vector<16x128xf32>
    %111 = vector.broadcast %8 : vector<1x128xf32> to vector<16x128xf32>
    %112 = arith.mulf %110, %111 : vector<16x128xf32>
    %113 = vector.broadcast %10 : vector<1x128xf32> to vector<16x128xf32>
    %114 = arith.mulf %112, %113 : vector<16x128xf32>
    %115 = arith.addf %106, %114 : vector<16x128xf32>
    %c0_24 = arith.constant 0 : index
    %c0_25 = arith.constant 0 : index
    %116 = vector.load %arg3[%c0_24, %c0_25] : memref<16x1xf32, #tpu.memory_space<vmem>>, vector<16x1xf32>
    %117 = vector.broadcast %116 : vector<16x1xf32> to vector<16x128xf32>
    %118 = arith.addf %115, %117 : vector<16x128xf32>
    %cst_26 = arith.constant dense<0.000000e+00> : vector<16xf32>
    %119 = vector.multi_reduction <add>, %37, %cst_26 [1] : vector<16x128xf32> to vector<16xf32>
    %120 = vector.shape_cast %119 : vector<16xf32> to vector<16x1xf32>
    %cst_27 = arith.constant 0.000000e+00 : f32
    %121 = vector.broadcast %cst_27 : f32 to vector<16x1xf32>
    %122 = arith.addf %121, %120 : vector<16x1xf32>
    %cst_28 = arith.constant dense<0.000000e+00> : vector<16xf32>
    %123 = vector.multi_reduction <add>, %64, %cst_28 [1] : vector<16x128xf32> to vector<16xf32>
    %124 = vector.shape_cast %123 : vector<16xf32> to vector<16x1xf32>
    %125 = arith.addf %122, %124 : vector<16x1xf32>
    %cst_29 = arith.constant dense<0.000000e+00> : vector<16xf32>
    %126 = vector.multi_reduction <add>, %91, %cst_29 [1] : vector<16x128xf32> to vector<16xf32>
    %127 = vector.shape_cast %126 : vector<16xf32> to vector<16x1xf32>
    %128 = arith.addf %125, %127 : vector<16x1xf32>
    %cst_30 = arith.constant dense<0.000000e+00> : vector<16xf32>
    %129 = vector.multi_reduction <add>, %118, %cst_30 [1] : vector<16x128xf32> to vector<16xf32>
    %130 = vector.shape_cast %129 : vector<16xf32> to vector<16x1xf32>
    %131 = arith.addf %128, %130 : vector<16x1xf32>
    %cst_31 = arith.constant 5.120000e+02 : f32
    %132 = vector.broadcast %cst_31 : f32 to vector<16x1xf32>
    %133 = arith.divf %131, %132 : vector<16x1xf32>
    %134 = vector.broadcast %133 : vector<16x1xf32> to vector<16x128xf32>
    %135 = arith.subf %37, %134 : vector<16x128xf32>
    %136 = arith.mulf %135, %135 : vector<16x128xf32>
    %cst_32 = arith.constant dense<0.000000e+00> : vector<16xf32>
    %137 = vector.multi_reduction <add>, %136, %cst_32 [1] : vector<16x128xf32> to vector<16xf32>
    %138 = vector.shape_cast %137 : vector<16xf32> to vector<16x1xf32>
    %cst_33 = arith.constant 0.000000e+00 : f32
    %139 = vector.broadcast %cst_33 : f32 to vector<16x1xf32>
    %140 = arith.addf %139, %138 : vector<16x1xf32>
    %141 = vector.broadcast %133 : vector<16x1xf32> to vector<16x128xf32>
    %142 = arith.subf %64, %141 : vector<16x128xf32>
    %143 = arith.mulf %142, %142 : vector<16x128xf32>
    %cst_34 = arith.constant dense<0.000000e+00> : vector<16xf32>
    %144 = vector.multi_reduction <add>, %143, %cst_34 [1] : vector<16x128xf32> to vector<16xf32>
    %145 = vector.shape_cast %144 : vector<16xf32> to vector<16x1xf32>
    %146 = arith.addf %140, %145 : vector<16x1xf32>
    %147 = vector.broadcast %133 : vector<16x1xf32> to vector<16x128xf32>
    %148 = arith.subf %91, %147 : vector<16x128xf32>
    %149 = arith.mulf %148, %148 : vector<16x128xf32>
    %cst_35 = arith.constant dense<0.000000e+00> : vector<16xf32>
    %150 = vector.multi_reduction <add>, %149, %cst_35 [1] : vector<16x128xf32> to vector<16xf32>
    %151 = vector.shape_cast %150 : vector<16xf32> to vector<16x1xf32>
    %152 = arith.addf %146, %151 : vector<16x1xf32>
    %153 = vector.broadcast %133 : vector<16x1xf32> to vector<16x128xf32>
    %154 = arith.subf %118, %153 : vector<16x128xf32>
    %155 = arith.mulf %154, %154 : vector<16x128xf32>
    %cst_36 = arith.constant dense<0.000000e+00> : vector<16xf32>
    %156 = vector.multi_reduction <add>, %155, %cst_36 [1] : vector<16x128xf32> to vector<16xf32>
    %157 = vector.shape_cast %156 : vector<16xf32> to vector<16x1xf32>
    %158 = arith.addf %152, %157 : vector<16x1xf32>
    %cst_37 = arith.constant 5.120000e+02 : f32
    %159 = vector.broadcast %cst_37 : f32 to vector<16x1xf32>
    %160 = arith.divf %158, %159 : vector<16x1xf32>
    %cst_38 = arith.constant 9.99999974E-6 : f32
    %161 = vector.broadcast %cst_38 : f32 to vector<16x1xf32>
    %162 = arith.addf %160, %161 : vector<16x1xf32>
    %163 = math.rsqrt %162 : vector<16x1xf32>
    %164 = vector.broadcast %133 : vector<16x1xf32> to vector<16x128xf32>
    %165 = arith.subf %37, %164 : vector<16x128xf32>
    %166 = vector.broadcast %163 : vector<16x1xf32> to vector<16x128xf32>
    %167 = arith.mulf %165, %166 : vector<16x128xf32>
    %168 = vector.broadcast %133 : vector<16x1xf32> to vector<16x128xf32>
    %169 = arith.subf %64, %168 : vector<16x128xf32>
    %170 = vector.broadcast %163 : vector<16x1xf32> to vector<16x128xf32>
    %171 = arith.mulf %169, %170 : vector<16x128xf32>
    %172 = vector.broadcast %133 : vector<16x1xf32> to vector<16x128xf32>
    %173 = arith.subf %91, %172 : vector<16x128xf32>
    %174 = vector.broadcast %163 : vector<16x1xf32> to vector<16x128xf32>
    %175 = arith.mulf %173, %174 : vector<16x128xf32>
    %176 = vector.broadcast %133 : vector<16x1xf32> to vector<16x128xf32>
    %177 = arith.subf %118, %176 : vector<16x128xf32>
    %178 = vector.broadcast %163 : vector<16x1xf32> to vector<16x128xf32>
    %179 = arith.mulf %177, %178 : vector<16x128xf32>
    %180 = tpu.concatenate %167, %171, %175, %179 in 0 : vector<16x128xf32>, vector<16x128xf32>, vector<16x128xf32>, vector<16x128xf32> -> vector<64x128xf32>
    %c0_39 = arith.constant 0 : index
    %c0_40 = arith.constant 0 : index
    %181 = vector.load %arg5[%c0_39, %c0_40] : memref<64x128xf32, #tpu.memory_space<vmem>>, vector<64x128xf32>
    tpu.vector_store %arg5[%c0_39, %c0_40], %180 {strides = array<i32>} : memref<64x128xf32, #tpu.memory_space<vmem>>, vector<64x128xf32>,
    return
  }
  func.func @transform_0(%arg0: i32) -> (i32, i32) {
    %c0_i32 = arith.constant 0 : i32
    %c0_i32_0 = arith.constant 0 : i32
    %c0_i32_1 = arith.constant 0 : i32
    return %c0_i32, %c0_i32_0 : i32, i32
  }
  func.func @transform_1(%arg0: i32) -> (i32, i32) {
    %c0_i32 = arith.constant 0 : i32
    %c0_i32_0 = arith.constant 0 : i32
    %c0_i32_1 = arith.constant 0 : i32
    return %c0_i32, %c0_i32_0 : i32, i32
  }
  func.func @transform_2(%arg0: i32) -> (i32, i32) {
    %c0_i32 = arith.constant 0 : i32
    %c0_i32_0 = arith.constant 0 : i32
    %c0_i32_1 = arith.constant 0 : i32
    return %c0_i32, %c0_i32_0 : i32, i32
  }
  func.func @transform_3(%arg0: i32) -> (i32, i32) {
    %c0_i32 = arith.constant 0 : i32
    %c0_i32_0 = arith.constant 0 : i32
    %c0_i32_1 = arith.constant 0 : i32
    return %c0_i32, %c0_i32_0 : i32, i32
  }
  func.func @transform_4(%arg0: i32) -> (i32, i32) {
    %c0_i32 = arith.constant 0 : i32
    %c0_i32_0 = arith.constant 0 : i32
    %c0_i32_1 = arith.constant 0 : i32
    return %c0_i32, %c0_i32_0 : i32, i32
  }
}

</mosaic_0001>

<bundles_post_ra>
// kernel: tpu_custom_call.1
= control target key start
LH: loop header
LB: loop body
LE: loop exit
PB: predicated region body
PF: predicated region fallthrough
CT: control target
= control target key end

     0   :  { %vm141_vm0 = vcmask 261120   ;;  %v824_v7 = vmov 0   ;;  %s1073_s0 = inlined_call_operand.vmem [shape: f32[32,128], index: 0, kind: input, shape index: {}]   ;;  %s1074_s1 = inlined_call_operand.vmem [shape: bf16[256,32], index: 1, kind: input, shape index: {}]   ;;  %s1075_s2 = inlined_call_operand.vmem [shape: f32[16,1], index: 2, kind: input, shape index: {}]   ;;  %s1076_s3 = inlined_call_operand.vmem [shape: f32[4,128], index: 3, kind: input, shape index: {}]   ;;  %s1077_s4 = inlined_call_operand.hbm [shape: f32[64,128], index: 4, kind: output, shape index: {}]  }
   0x1   :  { %v19_v0 = vld [vmem:[%s1073_s0] sm:$0xff]  ;;  %v20_v1 = vld [vmem:[%s1073_s0 + $0x8] sm:$0xff]  ;;  %v21_v2 = vld [vmem:[%s1073_s0 + $0x10] sm:$0xff]  ;;  %779 = vset.pattern.permute.xlu1 %v824_v7  ;;  %778 = vset.pattern.permute.xlu0 %v824_v7 }
   0x2   :  { %v23_v3 = vmax.f32 %v19_v0, 0.0  ;;  %v24_v4 = vmax.f32 %v20_v1, 0.0  ;;  %v22_v5 = vld [vmem:[%s1073_s0 + $0x18] sm:$0xff]  ;;  %v25_v6 = vmax.f32 %v21_v2, 0.0  ;;  %v780_v9 = vld [vmem:[%s1074_s1] sm:$0xff]   ;;  %v782_v13 = vld [vmem:[%s1074_s1 + $0x8] sm:$0xff]  }
   0x3   :  { %v26_v8 = vmax.f32 %v22_v5, 0.0  ;;  %731 = vmatprep.mubr.msk.bf16.mxu0 %vm141_vm0, %v780_v9  ;;  %v781_v12 = vld [vmem:[%s1074_s1 + $0x40] sm:$0xff]   ;;  %v783_v14 = vld [vmem:[%s1074_s1 + $0x48] sm:$0xff]   ;;  %v784_v15 = vld [vmem:[%s1074_s1 + $0x50] sm:$0xff]  }
   0x4   :  { %v59_v10 = vpack.c.bf16 %v24_v4, %v23_v3  ;;  %747 = vmatprep.mubr.msk.bf16.mxu1 %vm141_vm0, %v781_v12  ;;  %v785_v16 = vld [vmem:[%s1074_s1 + $0x10] sm:$0xff]   ;;  %v786_v17 = vld [vmem:[%s1074_s1 + $0x58] sm:$0xff]   ;;  %v788_v19 = vld [vmem:[%s1074_s1 + $0x20] sm:$0xff]  }
   0x5   :  { %v60_v11 = vpack.c.bf16 %v26_v8, %v25_v6  ;;  %v787_v18 = vld [vmem:[%s1074_s1 + $0x18] sm:$0xff]   ;;  %v408_v20 = vld [vmem:[%s1075_s2 + $0x8] sm:$0xff]  ;;  %v790_v21 = vld [vmem:[%s1074_s1 + $0x60] sm:$0xff]  }
   0x6   :  { %727 = vmatprep.subr.bf16.mxu0 %v59_v10  ;;  %763 = vmatprep.subr.bf16.mxu1 %v59_v10  ;;  %v407_v22 = vld [vmem:[%s1075_s2] sm:$0xff] }
   0x7   :  { %728 = vmatpush3.bf16.msra.mxu0 %v59_v10  ;;  %765 = vmatpush3.bf16.msra.mxu1 %v59_v10 }
   0x8   :  { %729 = vmatprep.subr.bf16.mxu0 %v60_v11  ;;  %764 = vmatprep.subr.bf16.mxu1 %v60_v11 }
   0x9   :  { %416 = vperm.xlu1 %779, %v408_v20  }
   0xb   :  { %730 = vmatpush3.bf16.msra.mxu0 %v60_v11  ;;  %766 = vmatpush3.bf16.msra.mxu1 %v60_v11 }
   0xe   :  { %732 = vmatmul.mubr.msk.bf16.vlgmr.msra.gmra.mrb[0].mxu0 %vm141_vm0, %v782_v13  ;;  %748 = vmatmul.mubr.msk.bf16.vlgmr.msra.gmra.mrb[0].mxu1 %vm141_vm0, %v783_v14 }
   0xf   :  { %751 = vmatprep.mubr.msk.bf16.mxu1 %vm141_vm0, %v784_v15  ;;  %735 = vmatprep.mubr.msk.bf16.mxu0 %vm141_vm0, %v785_v16 }
  0x10   :  { %9 = vsyncpa [#allocation3], 0  ;;  %411 = vperm.xlu0 %778, %v407_v22   ;;  %v789_v23 = vld [vmem:[%s1074_s1 + $0x28] sm:$0xff]   ;;  %v792_v25 = vld [vmem:[%s1074_s1 + $0x30] sm:$0xff]   ;;  %s825_s30 = smov 120   ;;  %s827_s5 = smov 1   ;;  %v363_v63 = vlaneseq }
  0x11   :  { %v791_v24 = vld [vmem:[%s1074_s1 + $0x68] sm:$0xff]   ;;  %v794_v26 = vld [vmem:[%s1074_s1 + $0x70] sm:$0xff]   ;;  %v793_v27 = vld [vmem:[%s1074_s1 + $0x38] sm:$0xff]   ;;  %s828_s6 = smov 121   ;;  %s829_s7 = smov 8   ;;  %vm360_vm1 = vcmask 7168  }
  0x12   :  { %v795_v28 = vld [vmem:[%s1074_s1 + $0x78] sm:$0xff]   ;;  %s826_s1 = smov 127   ;;  %s830_s8 = smov 7   ;;  %v364_v0 = vshrl.u32 %v363_v63, 7  ;;  %v351_v5 = vld [vmem:[%s1076_s3] sm:$0xf] }
  0x13   :  { %s831_s9 = smov 9   ;;  %s832_s10 = smov 119   ;;  %vm495_vm2 = vcmask 982016   ;;  %vm514_vm3 = vcmask 990208   ;;  %vm429_vm4 = vcmask 1039360   ;;  %vm379_vm5 = vcmask 64512  }
  0x14   :  { %v365_v3 = vsub.s32 2, %v364_v0  ;;  %v500_v6 = vsub.s32 1, %v364_v0  ;;  %vm462_vm6 = vcmask 56320   ;;  %vm398_vm7 = vcmask 72704   ;;  %s833_s3 = smov [#allocation2]  }
  0x15   :  { %vm561_vm8 = vcmask 973824   ;;  %s666_s13 = sshll.u32 %s833_s3, 4  ;;  %s667_s13 = int_to_ptr.vmem [resolvable:$true] %s666_s13 }
  0x16   :  { %752 = vmatmul.mubr.msk.bf16.gmra.mrb[4].mxu1 %vm141_vm0, %v786_v17  ;;  %736 = vmatmul.mubr.msk.bf16.gmra.mrb[4].mxu0 %vm141_vm0, %v787_v18  ;;  %v983_v8 = vrot.slane %v351_v5, %v365_v3  ;;  %v986_v11 = vrot.slane %v351_v5, %v500_v6  ;;  %s800_s14 = scalar_lea.vmem %s667_s13, 1024  ;;  %p805_p1 = scmp.lt.s32.totalorder %s667_s13, %s667_s13 }
  0x17   :  { %739 = vmatprep.mubr.msk.bf16.mxu0 %vm141_vm0, %v788_v19  ;;  %755 = vmatprep.mubr.msk.bf16.mxu1 %vm141_vm0, %v790_v21  ;;  %p801_p0 = scmp.ne.s32.totalorder %s667_s13, %s800_s14  ;;  %p806_p2 = scmp.lt.s32.totalorder %s800_s14, %s800_s14 }
  0x19   :  { %p807_p3 = por %p806_p2, %p805_p1 }
  0x1b   :  { %p808_p4 = pnand %p807_p3, %p801_p0 }
  0x1e   :  { %740 = vmatmul.mubr.msk.bf16.gmra.mrb[8].mxu0 %vm141_vm0, %v789_v23  ;;  %756 = vmatmul.mubr.msk.bf16.gmra.mrb[8].mxu1 %vm141_vm0, %v791_v24 }
  0x1f   :  { %743 = vmatprep.mubr.msk.bf16.mxu0 %vm141_vm0, %v792_v25  ;;  %759 = vmatprep.mubr.msk.bf16.mxu1 %vm141_vm0, %v794_v26 }
  0x26   :  { %744 = vmatmul.mubr.msk.bf16.gmra.mrb[12].mxu0 %vm141_vm0, %v793_v27  ;;  %760 = vmatmul.mubr.msk.bf16.gmra.mrb[12].mxu1 %vm141_vm0, %v795_v28 }
  0x88   :  { %v974_v61 = vpop.permute.xlu1 %416 }
  0x8f   :  { %v976_v62 = vpop.permute.xlu0 %411 }
  0xe1   :  { %v733_v29 = vpop.f32.mrb[0].mxu0  ;;  %v942_v30 = vpop.f32.mrb[0].mxu1 }
  0xe2   :  { %v288_v31 = vpop.f32.mrb[1].mxu1  ;;  %489 = vrot.lane.b32.xlu1 %v733_v29, %s825_s30  ;;  %v224_v32 = vpop.f32.mrb[1].mxu0 }
  0xe3   :  { %v734_v33 = vpop.f32.mrb[2].mxu0  ;;  %v945_v34 = vpop.f32.mrb[2].mxu1 }
  0xe4   :  { %v291_v35 = vpop.f32.mrb[3].mxu1  ;;  %491 = vrot.lane.b32.xlu0 %v734_v33, %s825_s30  ;;  %v227_v36 = vpop.f32.mrb[3].mxu0 }
  0xe6   :  { %527 = vrot.lane.b32.xlu1 %v288_v31, %s826_s1 }
  0xe8   :  { %529 = vrot.lane.b32.xlu0 %v291_v35, %s826_s1 }
  0xe9   :  { %v753_v37 = vpop.f32.mrb[4].mxu1  ;;  %v737_v38 = vpop.f32.mrb[4].mxu0 }
  0xea   :  { %v950_v39 = vpop.f32.mrb[5].mxu1  ;;  %475 = vrot.lane.b32.xlu1 %v753_v37, %s827_s5  ;;  %v240_v40 = vpop.f32.mrb[5].mxu0 }
  0xeb   :  { %v754_v41 = vpop.f32.mrb[6].mxu1  ;;  %v738_v42 = vpop.f32.mrb[6].mxu0 }
  0xec   :  { %v953_v43 = vpop.f32.mrb[7].mxu1  ;;  %477 = vrot.lane.b32.xlu0 %v754_v41, %s827_s5  ;;  %v243_v44 = vpop.f32.mrb[7].mxu0 }
  0xee   :  { %508 = vrot.lane.b32.xlu1 %v737_v38, %s828_s6 }
  0xf0   :  { %510 = vrot.lane.b32.xlu0 %v738_v42, %s828_s6 }
  0xf1   :  { %v956_v45 = vpop.f32.mrb[8].mxu0  ;;  %v757_v46 = vpop.f32.mrb[8].mxu1 }
  0xf2   :  { %541 = vrot.lane.b32.xlu1 %v240_v40, %s825_s30  ;;  %v256_v47 = vpop.f32.mrb[9].mxu0  ;;  %v320_v48 = vpop.f32.mrb[9].mxu1 }
  0xf3   :  { %v959_v49 = vpop.f32.mrb[10].mxu0  ;;  %v758_v50 = vpop.f32.mrb[10].mxu1 }
  0xf4   :  { %543 = vrot.lane.b32.xlu0 %v243_v44, %s825_s30  ;;  %v259_v51 = vpop.f32.mrb[11].mxu0  ;;  %v323_v52 = vpop.f32.mrb[11].mxu1  ;;  %v434_v44 = vsub.s32 3, %v364_v0 }
  0xf6   :  { %423 = vrot.lane.b32.xlu1 %v256_v47, %s826_s1 }
  0xf8   :  { %373 = vrot.lane.b32.xlu0 %v757_v46, %s829_s7  ;;  %v384_v46 = vsub.s32 0, %v364_v0 }
  0xf9   :  { %v745_v53 = vpop.f32.mrb[12].mxu0  ;;  %v761_v54 = vpop.f32.mrb[12].mxu1 }
  0xfa   :  { %456 = vrot.lane.b32.xlu1 %v320_v48, %s830_s8  ;;  %v964_v55 = vpop.f32.mrb[13].mxu0  ;;  %v336_v56 = vpop.f32.mrb[13].mxu1 }
  0xfb   :  { %v746_v57 = vpop.f32.mrb[14].mxu0  ;;  %v762_v58 = vpop.f32.mrb[14].mxu1 }
  0xfc   :  { %458 = vrot.lane.b32.xlu0 %v323_v52, %s830_s8  ;;  %v966_v59 = vpop.f32.mrb[15].mxu0  ;;  %v339_v60 = vpop.f32.mrb[15].mxu1 }
  0xfe   :  { %375 = vrot.lane.b32.xlu1 %v758_v50, %s829_s7 }
 0x100   :  { %354 = vrot.lane.b32.xlu0 %v745_v53, %s827_s5  ;;  %v385_v53 = vrot.slane %v351_v5, %v384_v46 }
 0x102   :  { %425 = vrot.lane.b32.xlu1 %v259_v51, %s826_s1  ;;  %v1010_v51 = vrot.slane %v351_v5, %v434_v44 }
 0x104   :  { %392 = vrot.lane.b32.xlu0 %v761_v54, %s831_s9 }
 0x106   :  { %442 = vrot.lane.b32.xlu1 %v336_v56, %s829_s7 }
 0x108   :  { %356 = vrot.lane.b32.xlu0 %v746_v57, %s827_s5 }
 0x10a   :  { %394 = vrot.lane.b32.xlu1 %v762_v58, %s831_s9 }
 0x10c   :  { %444 = vrot.lane.b32.xlu0 %v339_v60, %s829_s7 }
 0x10e   :  { %555 = vrot.lane.b32.xlu1 %v224_v32, %s832_s10 }
 0x110   :  { %557 = vrot.lane.b32.xlu0 %v227_v36, %s832_s10 }
 0x154   :  { %v490_v1 = vpop.permute.xlu1 %489 }
 0x155   :  { %v496_v14 = vsel %vm495_vm2, %v490_v1, 0.0 }
 0x156   :  { %v492_v2 = vpop.permute.xlu0 %491  ;;  %v502_v21 = vmul.f32 %v986_v11, %v496_v14 }
 0x157   :  { %v497_v19 = vsel %vm495_vm2, %v492_v2, 0.0 }
 0x158   :  { %v528_v4 = vpop.permute.xlu1 %527  ;;  %v503_v26 = vmul.f32 %v986_v11, %v497_v19 }
 0x159   :  { %v533_v63 = vsel %vm429_vm4, %v528_v4, 0.0 }
 0x15a   :  { %v981_v7 = vpop.permute.xlu0 %529 }
 0x15b   :  { %v534_v19 = vsel %vm429_vm4, %v981_v7, 0.0 }
 0x15c   :  { %v476_v9 = vpop.permute.xlu1 %475 }
 0x15d   :  { %v481_v10 = vsel %vm360_vm1, 0.0, %v476_v9 }
 0x15e   :  { %v483_v12 = vmul.f32 %v481_v10, %v983_v8  ;;  %v478_v13 = vpop.permute.xlu0 %477 }
 0x15f   :  { %v482_v15 = vsel %vm360_vm1, 0.0, %v478_v13 }
 0x160   :  { %v485_v16 = vadd.f32 %v942_v30, %v483_v12  ;;  %v484_v17 = vmul.f32 %v482_v15, %v983_v8  ;;  %v509_v18 = vpop.permute.xlu1 %508  ;;  %v535_v12 = vmul.f32 %v533_v63, %v1010_v51 }
 0x161   :  { %v515_v20 = vsel %vm514_vm3, %v509_v18, 0.0 }
 0x162   :  { %v486_v22 = vadd.f32 %v945_v34, %v484_v17  ;;  %v517_v23 = vmul.f32 %v515_v20, %v986_v11  ;;  %v511_v24 = vpop.permute.xlu0 %510  ;;  %v504_v30 = vadd.f32 %v502_v21, %v485_v16 }
 0x163   :  { %v516_v25 = vsel %vm514_vm3, %v511_v24, 0.0 }
 0x164   :  { %v519_v27 = vmul.f32 %v517_v23, %v983_v8  ;;  %v518_v28 = vmul.f32 %v516_v25, %v986_v11  ;;  %v542_v29 = vpop.permute.xlu1 %541  ;;  %v505_v35 = vadd.f32 %v503_v26, %v486_v22 }
 0x165   :  { %v547_v20 = vsel %vm495_vm2, %v542_v29, 0.0 }
 0x166   :  { %v520_v31 = vmul.f32 %v518_v28, %v983_v8  ;;  %v544_v32 = vpop.permute.xlu0 %543  ;;  %v521_v33 = vadd.f32 %v519_v27, %v504_v30 }
 0x167   :  { %v548_v27 = vsel %vm495_vm2, %v544_v32, 0.0 }
 0x168   :  { %v424_v36 = vpop.permute.xlu1 %423  ;;  %v1002_v34 = vadd.f32 %v521_v33, %v976_v62  ;;  %v522_v37 = vadd.f32 %v520_v31, %v505_v35 }
 0x169   :  { %v430_v48 = vsel %vm429_vm4, %v424_v36, 0.0 }
 0x16a   :  { %v374_v38 = vpop.permute.xlu0 %373  ;;  %584 = vadd.xlane.f32.xlu0 %v1002_v34  ;;  %v1006_v40 = vadd.f32 %v522_v37, %v974_v61  ;;  %v436_v57 = vmul.f32 %v1010_v51, %v430_v48  ;;  %v536_v37 = vmul.f32 %v534_v19, %v1010_v51  ;;  %v537_v48 = vadd.f32 %v535_v12, %v950_v39 }
 0x16b   :  { %v380_v58 = vsel %vm379_vm5, 0.0, %v374_v38  ;;  %v549_v38 = vmul.f32 %v547_v20, %v986_v11 }
 0x16c   :  { %v457_v41 = vpop.permute.xlu1 %456  ;;  %586 = vadd.xlane.f32.xlu1 %v1006_v40  ;;  %v386_v3 = vmul.f32 %v385_v53, %v380_v58  ;;  %v438_v13 = vadd.f32 %v436_v57, %v964_v55 }
 0x16d   :  { %v463_v60 = vsel %vm462_vm6, 0.0, %v457_v41  ;;  %v551_v58 = vadd.f32 %v549_v38, %v537_v48 }
 0x16e   :  { %v459_v42 = vpop.permute.xlu0 %458  ;;  %v465_v5 = vmul.f32 %v463_v60, %v385_v53 }
 0x16f   :  { %v464_v14 = vsel %vm462_vm6, 0.0, %v459_v42 }
 0x170   :  { %v376_v47 = vpop.permute.xlu1 %375  ;;  %v467_v22 = vmul.f32 %v465_v5, %v1010_v51  ;;  %v466_v28 = vmul.f32 %v464_v14, %v385_v53 }
 0x172   :  { %v355_v50 = vpop.permute.xlu0 %354 }
 0x173   :  { %v361_v52 = vsel %vm360_vm1, 0.0, %v355_v50  ;;  %v550_v50 = vmul.f32 %v548_v27, %v986_v11 }
 0x174   :  { %v367_v54 = vmul.f32 %v983_v8, %v361_v52  ;;  %v426_v56 = vpop.permute.xlu1 %425 }
 0x175   :  { %v431_v6 = vsel %vm429_vm4, %v426_v56, 0.0 }
 0x176   :  { %v369_v0 = vadd.f32 %v956_v45, %v367_v54  ;;  %v393_v1 = vpop.permute.xlu0 %392  ;;  %v381_v45 = vsel %vm379_vm5, 0.0, %v376_v47  ;;  %v437_v21 = vmul.f32 %v1010_v51, %v431_v6  ;;  %v468_v54 = vmul.f32 %v466_v28, %v1010_v51 }
 0x177   :  { %v399_v2 = vsel %vm398_vm7, 0.0, %v393_v1  ;;  %v387_v30 = vmul.f32 %v385_v53, %v381_v45 }
 0x178   :  { %v401_v9 = vmul.f32 %v399_v2, %v385_v53  ;;  %v443_v10 = vpop.permute.xlu1 %442  ;;  %v388_v18 = vadd.f32 %v386_v3, %v369_v0  ;;  %v439_v41 = vadd.f32 %v437_v21, %v966_v59 }
 0x179   :  { %v448_v4 = vsel %vm379_vm5, 0.0, %v443_v10 }
 0x17a   :  { %v403_v15 = vmul.f32 %v401_v9, %v983_v8  ;;  %v450_v16 = vmul.f32 %v448_v4, %v385_v53  ;;  %v357_v17 = vpop.permute.xlu0 %356 }
 0x17b   :  { %v362_v55 = vsel %vm360_vm1, 0.0, %v357_v17 }
 0x17c   :  { %v452_v23 = vadd.f32 %v450_v16, %v438_v13  ;;  %v368_v24 = vmul.f32 %v983_v8, %v362_v55  ;;  %v395_v25 = vpop.permute.xlu1 %394  ;;  %v405_v26 = vadd.f32 %v403_v15, %v388_v18 }
 0x17d   :  { %v400_v31 = vsel %vm398_vm7, 0.0, %v395_v25 }
 0x17e   :  { %v370_v7 = vadd.f32 %v959_v49, %v368_v24  ;;  %v402_v29 = vmul.f32 %v400_v31, %v385_v53  ;;  %v445_v33 = vpop.permute.xlu0 %444  ;;  %v419_v35 = vadd.f32 %v976_v62, %v405_v26  ;;  %v469_v36 = vadd.f32 %v467_v22, %v452_v23 }
 0x17f   :  { %v449_v42 = vsel %vm379_vm5, 0.0, %v445_v33 }
 0x180   :  { %v404_v32 = vmul.f32 %v402_v29, %v983_v8  ;;  %v451_v44 = vmul.f32 %v449_v42, %v385_v53  ;;  %v556_v46 = vpop.permute.xlu1 %555  ;;  %572 = vadd.xlane.f32.xlu1 %v419_v35  ;;  %v471_v49 = vadd.f32 %v469_v36, %v976_v62  ;;  %v389_v47 = vadd.f32 %v387_v30, %v370_v7 }
 0x181   :  { %v562_v52 = vsel %vm561_vm8, %v556_v46, 0.0  ;;  %v538_v53 = vadd.f32 %v536_v37, %v953_v43 }
 0x182   :  { %v453_v56 = vadd.f32 %v451_v44, %v439_v41  ;;  %v564_v59 = vmul.f32 %v562_v52, %v986_v11  ;;  %578 = vadd.xlane.f32.xlu0 %v471_v49  ;;  %v558_v57 = vpop.permute.xlu0 %557  ;;  %v406_v8 = vadd.f32 %v404_v32, %v389_v47 }
 0x183   :  { %v563_v60 = vsel %vm561_vm8, %v558_v57, 0.0  ;;  %v552_v2 = vadd.f32 %v550_v50, %v538_v53 }
 0x184   :  { %v566_v63 = vmul.f32 %v564_v59, %v1010_v51  ;;  %v565_v39 = vmul.f32 %v563_v60, %v986_v11  ;;  %v420_v0 = vadd.f32 %v974_v61, %v406_v8  ;;  %v470_v1 = vadd.f32 %v468_v54, %v453_v56 }
 0x186   :  { %v567_v3 = vmul.f32 %v565_v39, %v1010_v51  ;;  %574 = vadd.xlane.f32.xlu0 %v420_v0  ;;  %v472_v5 = vadd.f32 %v470_v1, %v974_v61  ;;  %v568_v6 = vadd.f32 %v566_v63, %v551_v58 }
 0x188   :  { %580 = vadd.xlane.f32.xlu1 %v472_v5  ;;  %v570_v43 = vadd.f32 %v568_v6, %v976_v62  ;;  %v569_v9 = vadd.f32 %v567_v3, %v552_v2 }
 0x18a   :  { %590 = vadd.xlane.f32.xlu0 %v570_v43  ;;  %v571_v10 = vadd.f32 %v569_v9, %v974_v61 }
 0x18c   :  { %592 = vadd.xlane.f32.xlu1 %v571_v10 }
 0x1f7   :  { %v585_v12 = vpop.xlane.xlu0 %584 }
 0x1f9   :  { %v587_v11 = vpop.xlane.xlu1 %586 }
 0x20d   :  { %v573_v14 = vpop.xlane.xlu1 %572 }
 0x20f   :  { %v579_v13 = vpop.xlane.xlu0 %578 }
 0x210   :  { %v582_v4 = vadd.f32 %v579_v13, %v573_v14 }
 0x212   :  { %v588_v16 = vadd.f32 %v585_v12, %v582_v4 }
 0x213   :  { %v575_v45 = vpop.xlane.xlu0 %574 }
 0x215   :  { %v581_v15 = vpop.xlane.xlu1 %580 }
 0x216   :  { %v583_v51 = vadd.f32 %v581_v15, %v575_v45 }
 0x217   :  { %v591_v17 = vpop.xlane.xlu0 %590 }
 0x218   :  { %v594_v18 = vadd.f32 %v591_v17, %v588_v16  ;;  %v589_v19 = vadd.f32 %v587_v11, %v583_v51 }
 0x219   :  { %v593_v20 = vpop.xlane.xlu1 %592 }
 0x21a   :  { %v597_v21 = vmul.f32 0.001953125, %v594_v18  ;;  %v595_v62 = vadd.f32 %v593_v20, %v589_v19 }
 0x21c   :  { %v598_v55 = vmul.f32 0.001953125, %v595_v62  ;;  %v599_v22 = vsub.f32 %v419_v35, %v597_v21  ;;  %v609_v24 = vsub.f32 %v471_v49, %v597_v21  ;;  %v619_v28 = vsub.f32 %v1002_v34, %v597_v21 }
 0x21d   :  { %v629_v29 = vsub.f32 %v570_v43, %v597_v21 }
 0x21e   :  { %v601_v23 = vmul.f32 %v599_v22, %v599_v22  ;;  %v600_v61 = vsub.f32 %v420_v0, %v598_v55  ;;  %v610_v26 = vsub.f32 %v472_v5, %v598_v55  ;;  %v611_v27 = vmul.f32 %v609_v24, %v609_v24 }
 0x21f   :  { %v620_v31 = vsub.f32 %v1006_v40, %v598_v55  ;;  %v621_v7 = vmul.f32 %v619_v28, %v619_v28  ;;  %v630_v35 = vsub.f32 %v571_v10, %v598_v55  ;;  %v631_v36 = vmul.f32 %v629_v29, %v629_v29 }
 0x220   :  { %603 = vadd.xlane.f32.xlu0 %v601_v23  ;;  %v602_v25 = vmul.f32 %v600_v61, %v600_v61  ;;  %v612_v30 = vmul.f32 %v610_v26, %v610_v26 }
 0x221   :  { %v622_v33 = vmul.f32 %v620_v31, %v620_v31  ;;  %v632_v37 = vmul.f32 %v630_v35, %v630_v35 }
 0x222   :  { %605 = vadd.xlane.f32.xlu1 %v602_v25 }
 0x224   :  { %613 = vadd.xlane.f32.xlu0 %v611_v27 }
 0x226   :  { %615 = vadd.xlane.f32.xlu1 %v612_v30 }
 0x228   :  { %623 = vadd.xlane.f32.xlu0 %v621_v7 }
 0x22a   :  { %625 = vadd.xlane.f32.xlu1 %v622_v33 }
 0x22c   :  { %633 = vadd.xlane.f32.xlu0 %v631_v36 }
 0x22e   :  { %635 = vadd.xlane.f32.xlu1 %v632_v37 }
 0x2ad   :  { %v604_v38 = vpop.xlane.xlu0 %603 }
 0x2af   :  { %v606_v41 = vpop.xlane.xlu1 %605 }
 0x2b1   :  { %v614_v42 = vpop.xlane.xlu0 %613 }
 0x2b2   :  { %v617_v44 = vadd.f32 %v614_v42, %v604_v38 }
 0x2b3   :  { %v616_v32 = vpop.xlane.xlu1 %615 }
 0x2b4   :  { %v618_v49 = vadd.f32 %v616_v32, %v606_v41 }
 0x2b5   :  { %v624_v34 = vpop.xlane.xlu0 %623 }
 0x2b6   :  { %v627_v40 = vadd.f32 %v624_v34, %v617_v44 }
 0x2b7   :  { %v626_v46 = vpop.xlane.xlu1 %625 }
 0x2b8   :  { %v628_v48 = vadd.f32 %v626_v46, %v618_v49 }
 0x2b9   :  { %v634_v47 = vpop.xlane.xlu0 %633 }
 0x2ba   :  { %v637_v50 = vadd.f32 %v634_v47, %v627_v40 }
 0x2bb   :  { %v636_v52 = vpop.xlane.xlu1 %635 }
 0x2bc   :  { %v639_v54 = vmul.f32 0.001953125, %v637_v50  ;;  %v638_v56 = vadd.f32 %v636_v52, %v628_v48 }
 0x2be   :  { %v641_v59 = vadd.f32 1e-05, %v639_v54  ;;  %v640_v57 = vmul.f32 0.001953125, %v638_v56 }
 0x2c0   :  { %796 = vrsqrt.f32 %v641_v59  ;;  %v642_v8 = vadd.f32 1e-05, %v640_v57 }
 0x2c2   :  { %798 = vrsqrt.f32 %v642_v8 }
 0x2ca   :  { %v797_v53 = vpop.eup %796 }
 0x2cb   :  { %v645_v58 = vmul.f32 %v797_v53, %v599_v22  ;;  %v647_v60 = vmul.f32 %v797_v53, %v609_v24  ;;  %v649_v63 = vmul.f32 %v797_v53, %v619_v28  ;;  %v651_v39 = vmul.f32 %v797_v53, %v629_v29 }
 0x2cc   :  { %v799_v0 = vpop.eup %798 }
 0x2cd   :  { %v646_v1 = vmul.f32 %v799_v0, %v600_v61  ;;  %v648_v2 = vmul.f32 %v799_v0, %v610_v26  ;;  %v650_v3 = vmul.f32 %v799_v0, %v620_v31  ;;  %v652_v5 = vmul.f32 %v799_v0, %v630_v35  ;;  %653 = vst [vmem:[#allocation2] sm:$0xff] %v645_v58 }
 0x2ce   :  { %655 = vst [vmem:[#allocation2 + $0x10] sm:$0xff] %v647_v60  ;;  %657 = vst [vmem:[#allocation2 + $0x20] sm:$0xff] %v649_v63 }
 0x2cf   :  { %659 = vst [vmem:[#allocation2 + $0x30] sm:$0xff] %v651_v39  ;;  %654 = vst [vmem:[#allocation2 + $0x8] sm:$0xff] %v646_v1 }
 0x2d0   :  { %656 = vst [vmem:[#allocation2 + $0x18] sm:$0xff] %v648_v2  ;;  %658 = vst [vmem:[#allocation2 + $0x28] sm:$0xff] %v650_v3 }
 0x2d1   :  { %660 = vst [vmem:[#allocation2 + $0x38] sm:$0xff] %v652_v5 }
 0x2d2   :  { %811 = shalt.err (!%p808_p4)
}
 0x2d3   :  { %s812_s17 = scalar_lea.hbm %s1077_s4, 1024 }
 0x2d4   :  { %p813_p5 = scmp.ne.s32.totalorder %s1077_s4, %s812_s17  ;;  %p816_p6 = scmp.lt.u32.totalorder %s812_s17, %s1077_s4 }
 0x2d6   :  { %p818_p7 = pnand %p816_p6, %p813_p5 }
 0x2d8   :  { %821 = shalt.err (!%p818_p7)
}
 0x2d9   :  { %s834_s22 = smov 128  }
 0x2da   :  { %672 = dma.vmem_to_hbm [thread:$0]  %s667_s13, 1024, %s1077_s4, [#allocation3], %s834_s22, %s834_s22, %s829_s7  }
 0x2db   :  { %822 = dma.done.wait [#allocation3], 1024  }
 0x2dc   :  { %823 = vsyncadd [#allocation3], 4294966272 }
 0x2dd   :  { %676 = vsyncpa [#allocation3], 1 }

</bundles_post_ra>
